<compile_context>
chip_gen: v5e
topology: v5e:2x2
jax: 0.10.0
libtpu: 0.0.40
codegen_flags: <defaults>
</compile_context>

<pallas_src>
import jax
import jax.numpy as jnp
import numpy as np
from jax.experimental import pallas as pl
from jax.experimental.pallas import tpu as pltpu


# ----------------------------------------------------------------------------
# Pallas kernel: one (batch element, layer) per grid step.
# ----------------------------------------------------------------------------
def make_wn_kernel(H, K, G, n_layers, dilation_rate, T, max_pad):
    KH = K * H

    def kernel(len_ref,                      # scalar prefetch: (B,) int32 lengths (SMEM)
               x_ref, g_ref,                 # (1,T,H) f32, (1,T,G) bf16
               w_ref, b_ref,                 # (L,K*H+G,2H) bf16, (L,1,2H) f32  (resident)
               rsw_ref, rsb_ref,             # (L,H,2H) f32,      (L,1,2H) f32  (resident)
               out_ref,                      # (1,T,H)
               xpad_sc, out_sc, ops_sc):     # VMEM scratch
        b = pl.program_id(0)
        i = pl.program_id(1)

        @pl.when(i == 0)
        def _init():
            xpad_sc[...] = jnp.zeros_like(xpad_sc)
            xpad_sc[max_pad:max_pad + T, :] = x_ref[0].astype(jnp.float32)
            out_sc[...] = jnp.zeros_like(out_sc)
            # Conditioning part of the fused matmul operand: written once per batch.
            ops_sc[:, KH:] = g_ref[0]

        # Length mask built in-kernel (full lane occupancy, no (T,1) input stream).
        length = len_ref[b]
        mask = (jax.lax.broadcasted_iota(jnp.int32, (T, H), 0) < length
                ).astype(jnp.float32)

        # Stage the K dilated taps of the residual with STATIC offsets: the per-layer
        # dilations are compile-time constants selected via an unrolled pl.when chain.
        for layer in range(n_layers):
            @pl.when(i == layer)
            def _stage(layer=layer):
                d = dilation_rate ** layer
                pad = d * (K - 1) // 2
                base = max_pad - pad
                for k in range(K):
                    ops_sc[:, k * H:(k + 1) * H] = (
                        xpad_sc[base + k * d: base + k * d + T, :]
                        .astype(jnp.bfloat16))

        # One fused MXU matmul per layer: dilated conv + conditioning 1x1 conv.
        x_in = jnp.dot(ops_sc[...], w_ref[i],
                       preferred_element_type=jnp.float32) + b_ref[i]

        # dropout p=0 (eval) -> identity; gated activation in f32.
        acts = jnp.tanh(x_in[:, :H]) * jax.nn.sigmoid(x_in[:, H:])

        # res/skip 1x1 conv (tiny -> kept f32 for numerics; last layer zero-padded to 2H).
        rs = jnp.dot(acts, rsw_ref[i], preferred_element_type=jnp.float32) + rsb_ref[i]

        @pl.when(i < n_layers - 1)
        def _mid():
            xpad_sc[max_pad:max_pad + T, :] = (
                xpad_sc[max_pad:max_pad + T, :] + rs[:, :H]) * mask
            out_sc[...] = out_sc[...] + rs[:, H:]

        @pl.when(i == n_layers - 1)
        def _last():
            out_ref[0] = ((out_sc[...] + rs[:, :H]) * mask).astype(out_ref.dtype)

    return kernel


def wn_forward_pallas(x_btc, lengths, g_btg, params, H, K, n_layers, dilation_rate):
    B, T, _ = x_btc.shape
    G = g_btg.shape[-1]
    wfused, bfused, rsw, rsb = params
    max_pad = dilation_rate ** (n_layers - 1) * (K - 1) // 2
    L = n_layers
    KHG = K * H + G

    kernel = make_wn_kernel(H, K, G, n_layers, dilation_rate, T, max_pad)

    grid_spec = pltpu.PrefetchScalarGridSpec(
        num_scalar_prefetch=1,
        grid=(B, n_layers),
        in_specs=[
            pl.BlockSpec((1, T, H), lambda b, i, lens: (b, 0, 0)),
            pl.BlockSpec((1, T, G), lambda b, i, lens: (b, 0, 0)),
            # Full weight stack resident (constant block index -> fetched once).
            pl.BlockSpec((L, KHG, 2 * H), lambda b, i, lens: (0, 0, 0)),
            pl.BlockSpec((L, 1, 2 * H), lambda b, i, lens: (0, 0, 0)),
            pl.BlockSpec((L, H, 2 * H), lambda b, i, lens: (0, 0, 0)),
            pl.BlockSpec((L, 1, 2 * H), lambda b, i, lens: (0, 0, 0)),
        ],
        out_specs=pl.BlockSpec((1, T, H), lambda b, i, lens: (b, 0, 0)),
        scratch_shapes=[
            pltpu.VMEM((T + 2 * max_pad, H), jnp.float32),   # zero-padded residual x
            pltpu.VMEM((T, H), jnp.float32),                 # skip accumulator
            pltpu.VMEM((T, KHG), jnp.bfloat16),              # fused matmul operand
        ],
    )

    return pl.pallas_call(
        kernel,
        out_shape=jax.ShapeDtypeStruct((B, T, H), x_btc.dtype),
        grid_spec=grid_spec,
        compiler_params=pltpu.CompilerParams(
            dimension_semantics=("parallel", "arbitrary"),
            vmem_limit_bytes=64 * 1024 * 1024),
    )(lengths, x_btc, g_btg.astype(jnp.bfloat16), wfused, bfused, rsw, rsb)


# ----------------------------------------------------------------------------
# Pure-JAX f32 reference (mirrors the PyTorch forward in NCT layout).
# ----------------------------------------------------------------------------
def conv1d_ref(x_nct, w_oik, b_o, dilation, padding):
    out = jax.lax.conv_general_dilated(
        x_nct, w_oik, window_strides=(1,), padding=[(padding, padding)],
        rhs_dilation=(dilation,), dimension_numbers=('NCH', 'OIH', 'NCH'))
    return out + b_o[None, :, None]


def wn_forward_ref(x_nct, mask_n1t, g_nct, torch_params, H, K, n_layers, dilation_rate):
    in_ws, in_bs, rs_ws, rs_bs, cond_w, cond_b = torch_params
    g_all = conv1d_ref(g_nct, cond_w, cond_b, 1, 0)
    x = x_nct
    output = jnp.zeros_like(x_nct)
    for i in range(n_layers):
        d = dilation_rate ** i
        pad = d * (K - 1) // 2
        x_in = conv1d_ref(x, in_ws[i], in_bs[i], d, pad)
        g_l = g_all[:, i * 2 * H:(i + 1) * 2 * H, :]
        in_act = x_in + g_l
        acts = jnp.tanh(in_act[:, :H, :]) * jax.nn.sigmoid(in_act[:, H:, :])
        rs = conv1d_ref(acts, rs_ws[i], rs_bs[i], 1, 0)
        if i < n_layers - 1:
            x = (x + rs[:, :H, :]) * mask_n1t
            output = output + rs[:, H:, :]
        else:
            output = output + rs
    return output * mask_n1t


# ----------------------------------------------------------------------------
# Deterministic parameter init (PyTorch weight shapes; weight_norm at init is the
# identity re-parameterization, so plain weights are used directly).
# ----------------------------------------------------------------------------
def init_params(key, H, K, n_layers, gin_channels):
    keys = jax.random.split(key, 3 * n_layers + 2)
    in_ws, in_bs, rs_ws, rs_bs = [], [], [], []
    ki = 0
    for i in range(n_layers):
        in_ws.append(0.1 * jax.random.normal(keys[ki], (2 * H, H, K), jnp.float32)); ki += 1
        in_bs.append(0.1 * jax.random.normal(keys[ki], (2 * H,), jnp.float32)); ki += 1
        rs_out = 2 * H if i < n_layers - 1 else H
        rs_ws.append(0.1 * jax.random.normal(keys[ki], (rs_out, H, 1), jnp.float32))
        rs_bs.append(0.1 * jax.random.normal(jax.random.fold_in(keys[ki], 7),
                                             (rs_out,), jnp.float32)); ki += 1
    cond_w = 0.1 * jax.random.normal(keys[ki], (2 * H * n_layers, gin_channels, 1),
                                     jnp.float32); ki += 1
    cond_b = 0.1 * jax.random.normal(keys[ki], (2 * H * n_layers,), jnp.float32)
    return (in_ws, in_bs, rs_ws, rs_bs, cond_w, cond_b)


def torch_params_to_kernel(torch_params, H, K, n_layers):
    """Repack PyTorch-layout weights for the kernel: per-layer fused
    [dilated-conv ; conditioning-slice] weight (bf16) with folded bias, plus f32
    res/skip weights (last layer zero-padded to 2H output columns)."""
    in_ws, in_bs, rs_ws, rs_bs, cond_w, cond_b = torch_params
    wf_list, bf_list = [], []
    for i in range(n_layers):
        # (2H, H, K) -> tap-stacked (K*H, 2H), rows = [tap k][in-ch i].
        inw = jnp.transpose(in_ws[i], (2, 1, 0)).reshape(K * H, 2 * H)
        cw = cond_w[i * 2 * H:(i + 1) * 2 * H, :, 0].T            # (G, 2H)
        wf_list.append(jnp.concatenate([inw, cw], axis=0))        # (K*H+G, 2H)
        bf_list.append(in_bs[i] + cond_b[i * 2 * H:(i + 1) * 2 * H])
    wfused = jnp.stack(wf_list).astype(jnp.bfloat16)              # (L, K*H+G, 2H)
    bfused = jnp.stack(bf_list)[:, None, :]                       # (L, 1, 2H) f32

    rsw_list, rsb_list = [], []
    for i in range(n_layers):
        w = rs_ws[i][:, :, 0].T                                   # (H, rs_out)
        bb = rs_bs[i]
        if w.shape[1] < 2 * H:                                    # zero-pad last layer
            w = jnp.pad(w, ((0, 0), (0, 2 * H - w.shape[1])))
            bb = jnp.pad(bb, ((0, 2 * H - bb.shape[0]),))
        rsw_list.append(w)
        rsb_list.append(bb)
    rsw = jnp.stack(rsw_list)                                     # (L, H, 2H) f32
    rsb = jnp.stack(rsb_list)[:, None, :]                         # (L, 1, 2H) f32
    return (wfused, bfused, rsw, rsb)


if __name__ == "__main__":
    # Module hyperparameters (small, consistent with WN.__init__ asserts)
    H = 32            # hidden_channels (even)
    K = 3             # kernel_size (odd)
    dilation_rate = 2
    n_layers = 3
    G = 8             # gin_channels
    B, T = 2, 16

    key = jax.random.PRNGKey(0)
    k_x, k_g, k_p = jax.random.split(key, 3)

    # PyTorch-layout inputs: x (B, C, T), mask (B, 1, T), g (B, G, T)
    x_nct = jax.random.normal(k_x, (B, H, T), jnp.float32)
    g_nct = jax.random.normal(k_g, (B, G, T), jnp.float32)
    lengths = jnp.array([T, T - 4], jnp.int32)
    mask_n1t = (jnp.arange(T)[None, None, :] < lengths[:, None, None]).astype(jnp.float32)

    torch_params = init_params(k_p, H, K, n_layers, G)
    kernel_params = torch_params_to_kernel(torch_params, H, K, n_layers)

    # kernel inputs in (B, T, C) layout; mask is rebuilt in-kernel from lengths
    x_btc = jnp.transpose(x_nct, (0, 2, 1))
    g_btg = jnp.transpose(g_nct, (0, 2, 1))

    out_btc = wn_forward_pallas(x_btc, lengths, g_btg, kernel_params,
                                H, K, n_layers, dilation_rate)
    out_btc = jax.block_until_ready(out_btc)

    ref_nct = wn_forward_ref(x_nct, mask_n1t, g_nct, torch_params,
                             H, K, n_layers, dilation_rate)
    # bf16 operands in the fused matmul (f32 accumulation) -> looser tolerance than f32.
    np.testing.assert_allclose(np.asarray(jnp.transpose(out_btc, (0, 2, 1))),
                               np.asarray(ref_nct), rtol=3e-2, atol=3e-2)

    print("KERNEL_OK")
</pallas_src>

<mosaic_0001>
module attributes {stable_mosaic.version = 11 : i64} {
  func.func @kernel(%arg0: i32, %arg1: i32, %arg2: memref<2xi32, #tpu.memory_space<smem>>, %arg3: memref<1x16x32xf32, #tpu.memory_space<vmem>>, %arg4: memref<1x16x8xbf16, #tpu.memory_space<vmem>>, %arg5: memref<3x104x64xbf16, #tpu.memory_space<vmem>>, %arg6: memref<3x1x64xf32, #tpu.memory_space<vmem>>, %arg7: memref<3x32x64xf32, #tpu.memory_space<vmem>>, %arg8: memref<3x1x64xf32, #tpu.memory_space<vmem>>, %arg9: memref<1x16x32xf32, #tpu.memory_space<vmem>>, %arg10: memref<24x32xf32, #tpu.memory_space<vmem>>, %arg11: memref<16x32xf32, #tpu.memory_space<vmem>>, %arg12: memref<16x104xbf16, #tpu.memory_space<vmem>>) attributes {dimension_semantics = [#tpu.dimension_semantics<parallel>, #tpu.dimension_semantics<arbitrary>], iteration_bounds = array<i64: 2, 3>, scalar_prefetch = 1 : i64, scratch_operands = 3 : i64, tpu.core_type = #tpu.core_type<tc>, window_params = [{transform_indices = @transform_0, window_bounds = array<i64: 1, 16, 32>}, {transform_indices = @transform_1, window_bounds = array<i64: 1, 16, 8>}, {pipeline_mode = #tpu.pipeline_mode<synchronous>, transform_indices = @transform_2, window_bounds = array<i64: 3, 104, 64>}, {pipeline_mode = #tpu.pipeline_mode<synchronous>, transform_indices = @transform_3, window_bounds = array<i64: 3, 1, 64>}, {pipeline_mode = #tpu.pipeline_mode<synchronous>, transform_indices = @transform_4, window_bounds = array<i64: 3, 32, 64>}, {pipeline_mode = #tpu.pipeline_mode<synchronous>, transform_indices = @transform_5, window_bounds = array<i64: 3, 1, 64>}, {transform_indices = @transform_6, window_bounds = array<i64: 1, 16, 32>}]} {
    %c0_i32 = arith.constant 0 : i32
    %0 = arith.cmpi eq, %arg1, %c0_i32 : i32
    %1 = arith.extui %0 : i1 to i32
    %c0_i32_0 = arith.constant 0 : i32
    %2 = arith.cmpi ne, %1, %c0_i32_0 : i32
    scf.if %2 {
      %cst_20 = arith.constant 0.000000e+00 : f32
      %53 = vector.broadcast %cst_20 : f32 to vector<24x32xf32>
      %c0_21 = arith.constant 0 : index
      %c0_22 = arith.constant 0 : index
      %54 = vector.load %arg10[%c0_21, %c0_22] : memref<24x32xf32, #tpu.memory_space<vmem>>, vector<24x32xf32>
      tpu.vector_store %arg10[%c0_21, %c0_22], %53 {strides = array<i32>} : memref<24x32xf32, #tpu.memory_space<vmem>>, vector<24x32xf32>,
      %c0_23 = arith.constant 0 : index
      %c0_24 = arith.constant 0 : index
      %c0_25 = arith.constant 0 : index
      %55 = vector.load %arg3[%c0_23, %c0_24, %c0_25] : memref<1x16x32xf32, #tpu.memory_space<vmem>>, vector<1x16x32xf32>
      %56 = vector.shape_cast %55 : vector<1x16x32xf32> to vector<16x32xf32>
      %c4 = arith.constant 4 : index
      %c0_26 = arith.constant 0 : index
      %57 = vector.load %arg10[%c4, %c0_26] : memref<24x32xf32, #tpu.memory_space<vmem>>, vector<16x32xf32>
      tpu.vector_store %arg10[%c4, %c0_26], %56 {strides = array<i32>} : memref<24x32xf32, #tpu.memory_space<vmem>>, vector<16x32xf32>,
      %cst_27 = arith.constant 0.000000e+00 : f32
      %58 = vector.broadcast %cst_27 : f32 to vector<16x32xf32>
      %c0_28 = arith.constant 0 : index
      %c0_29 = arith.constant 0 : index
      %59 = vector.load %arg11[%c0_28, %c0_29] : memref<16x32xf32, #tpu.memory_space<vmem>>, vector<16x32xf32>
      tpu.vector_store %arg11[%c0_28, %c0_29], %58 {strides = array<i32>} : memref<16x32xf32, #tpu.memory_space<vmem>>, vector<16x32xf32>,
      %c0_30 = arith.constant 0 : index
      %c0_31 = arith.constant 0 : index
      %c0_32 = arith.constant 0 : index
      %60 = vector.load %arg4[%c0_30, %c0_31, %c0_32] : memref<1x16x8xbf16, #tpu.memory_space<vmem>>, vector<1x16x8xbf16>
      %61 = vector.shape_cast %60 : vector<1x16x8xbf16> to vector<16x8xbf16>
      %c0_33 = arith.constant 0 : index
      %c96 = arith.constant 96 : index
      %62 = vector.load %arg12[%c0_33, %c96] : memref<16x104xbf16, #tpu.memory_space<vmem>>, vector<16x8xbf16>
      tpu.vector_store %arg12[%c0_33, %c96], %61 {strides = array<i32>} : memref<16x104xbf16, #tpu.memory_space<vmem>>, vector<16x8xbf16>,
    } else {
    }
    %3 = arith.index_cast %arg0 : i32 to index
    %4 = memref.load %arg2[%3] : memref<2xi32, #tpu.memory_space<smem>>
    %5 = tpu.iota {dimensions = array<i32: 0>} : vector<16x32xi32>
    %6 = vector.broadcast %4 : i32 to vector<16x32xi32>
    %7 = arith.cmpi slt, %5, %6 : vector<16x32xi32>
    %8 = arith.extui %7 : vector<16x32xi1> to vector<16x32xi32>
    %9 = arith.sitofp %8 : vector<16x32xi32> to vector<16x32xf32>
    %c0_i32_1 = arith.constant 0 : i32
    %10 = arith.cmpi eq, %arg1, %c0_i32_1 : i32
    %11 = arith.extui %10 : i1 to i32
    %c0_i32_2 = arith.constant 0 : i32
    %12 = arith.cmpi ne, %11, %c0_i32_2 : i32
    scf.if %12 {
      %c3 = arith.constant 3 : index
      %c0_20 = arith.constant 0 : index
      %53 = vector.load %arg10[%c3, %c0_20] : memref<24x32xf32, #tpu.memory_space<vmem>>, vector<16x32xf32>
      %54 = arith.truncf %53 : vector<16x32xf32> to vector<16x32xbf16>
      %c0_21 = arith.constant 0 : index
      %c0_22 = arith.constant 0 : index
      %55 = vector.load %arg12[%c0_21, %c0_22] : memref<16x104xbf16, #tpu.memory_space<vmem>>, vector<16x32xbf16>
      tpu.vector_store %arg12[%c0_21, %c0_22], %54 {strides = array<i32>} : memref<16x104xbf16, #tpu.memory_space<vmem>>, vector<16x32xbf16>,
      %c4 = arith.constant 4 : index
      %c0_23 = arith.constant 0 : index
      %56 = vector.load %arg10[%c4, %c0_23] : memref<24x32xf32, #tpu.memory_space<vmem>>, vector<16x32xf32>
      %57 = arith.truncf %56 : vector<16x32xf32> to vector<16x32xbf16>
      %c0_24 = arith.constant 0 : index
      %c32 = arith.constant 32 : index
      %58 = vector.load %arg12[%c0_24, %c32] : memref<16x104xbf16, #tpu.memory_space<vmem>>, vector<16x32xbf16>
      tpu.vector_store %arg12[%c0_24, %c32], %57 {strides = array<i32>} : memref<16x104xbf16, #tpu.memory_space<vmem>>, vector<16x32xbf16>,
      %c5 = arith.constant 5 : index
      %c0_25 = arith.constant 0 : index
      %59 = vector.load %arg10[%c5, %c0_25] : memref<24x32xf32, #tpu.memory_space<vmem>>, vector<16x32xf32>
      %60 = arith.truncf %59 : vector<16x32xf32> to vector<16x32xbf16>
      %c0_26 = arith.constant 0 : index
      %c64 = arith.constant 64 : index
      %61 = vector.load %arg12[%c0_26, %c64] : memref<16x104xbf16, #tpu.memory_space<vmem>>, vector<16x32xbf16>
      tpu.vector_store %arg12[%c0_26, %c64], %60 {strides = array<i32>} : memref<16x104xbf16, #tpu.memory_space<vmem>>, vector<16x32xbf16>,
    } else {
    }
    %c1_i32 = arith.constant 1 : i32
    %13 = arith.cmpi eq, %arg1, %c1_i32 : i32
    %14 = arith.extui %13 : i1 to i32
    %c0_i32_3 = arith.constant 0 : i32
    %15 = arith.cmpi ne, %14, %c0_i32_3 : i32
    scf.if %15 {
      %c2 = arith.constant 2 : index
      %c0_20 = arith.constant 0 : index
      %53 = vector.load %arg10[%c2, %c0_20] : memref<24x32xf32, #tpu.memory_space<vmem>>, vector<16x32xf32>
      %54 = arith.truncf %53 : vector<16x32xf32> to vector<16x32xbf16>
      %c0_21 = arith.constant 0 : index
      %c0_22 = arith.constant 0 : index
      %55 = vector.load %arg12[%c0_21, %c0_22] : memref<16x104xbf16, #tpu.memory_space<vmem>>, vector<16x32xbf16>
      tpu.vector_store %arg12[%c0_21, %c0_22], %54 {strides = array<i32>} : memref<16x104xbf16, #tpu.memory_space<vmem>>, vector<16x32xbf16>,
      %c4 = arith.constant 4 : index
      %c0_23 = arith.constant 0 : index
      %56 = vector.load %arg10[%c4, %c0_23] : memref<24x32xf32, #tpu.memory_space<vmem>>, vector<16x32xf32>
      %57 = arith.truncf %56 : vector<16x32xf32> to vector<16x32xbf16>
      %c0_24 = arith.constant 0 : index
      %c32 = arith.constant 32 : index
      %58 = vector.load %arg12[%c0_24, %c32] : memref<16x104xbf16, #tpu.memory_space<vmem>>, vector<16x32xbf16>
      tpu.vector_store %arg12[%c0_24, %c32], %57 {strides = array<i32>} : memref<16x104xbf16, #tpu.memory_space<vmem>>, vector<16x32xbf16>,
      %c6 = arith.constant 6 : index
      %c0_25 = arith.constant 0 : index
      %59 = vector.load %arg10[%c6, %c0_25] : memref<24x32xf32, #tpu.memory_space<vmem>>, vector<16x32xf32>
      %60 = arith.truncf %59 : vector<16x32xf32> to vector<16x32xbf16>
      %c0_26 = arith.constant 0 : index
      %c64 = arith.constant 64 : index
      %61 = vector.load %arg12[%c0_26, %c64] : memref<16x104xbf16, #tpu.memory_space<vmem>>, vector<16x32xbf16>
      tpu.vector_store %arg12[%c0_26, %c64], %60 {strides = array<i32>} : memref<16x104xbf16, #tpu.memory_space<vmem>>, vector<16x32xbf16>,
    } else {
    }
    %c2_i32 = arith.constant 2 : i32
    %16 = arith.cmpi eq, %arg1, %c2_i32 : i32
    %17 = arith.extui %16 : i1 to i32
    %c0_i32_4 = arith.constant 0 : i32
    %18 = arith.cmpi ne, %17, %c0_i32_4 : i32
    scf.if %18 {
      %c0_20 = arith.constant 0 : index
      %c0_21 = arith.constant 0 : index
      %53 = vector.load %arg10[%c0_20, %c0_21] : memref<24x32xf32, #tpu.memory_space<vmem>>, vector<16x32xf32>
      %54 = arith.truncf %53 : vector<16x32xf32> to vector<16x32xbf16>
      %c0_22 = arith.constant 0 : index
      %c0_23 = arith.constant 0 : index
      %55 = vector.load %arg12[%c0_22, %c0_23] : memref<16x104xbf16, #tpu.memory_space<vmem>>, vector<16x32xbf16>
      tpu.vector_store %arg12[%c0_22, %c0_23], %54 {strides = array<i32>} : memref<16x104xbf16, #tpu.memory_space<vmem>>, vector<16x32xbf16>,
      %c4 = arith.constant 4 : index
      %c0_24 = arith.constant 0 : index
      %56 = vector.load %arg10[%c4, %c0_24] : memref<24x32xf32, #tpu.memory_space<vmem>>, vector<16x32xf32>
      %57 = arith.truncf %56 : vector<16x32xf32> to vector<16x32xbf16>
      %c0_25 = arith.constant 0 : index
      %c32 = arith.constant 32 : index
      %58 = vector.load %arg12[%c0_25, %c32] : memref<16x104xbf16, #tpu.memory_space<vmem>>, vector<16x32xbf16>
      tpu.vector_store %arg12[%c0_25, %c32], %57 {strides = array<i32>} : memref<16x104xbf16, #tpu.memory_space<vmem>>, vector<16x32xbf16>,
      %c8 = arith.constant 8 : index
      %c0_26 = arith.constant 0 : index
      %59 = vector.load %arg10[%c8, %c0_26] : memref<24x32xf32, #tpu.memory_space<vmem>>, vector<16x32xf32>
      %60 = arith.truncf %59 : vector<16x32xf32> to vector<16x32xbf16>
      %c0_27 = arith.constant 0 : index
      %c64 = arith.constant 64 : index
      %61 = vector.load %arg12[%c0_27, %c64] : memref<16x104xbf16, #tpu.memory_space<vmem>>, vector<16x32xbf16>
      tpu.vector_store %arg12[%c0_27, %c64], %60 {strides = array<i32>} : memref<16x104xbf16, #tpu.memory_space<vmem>>, vector<16x32xbf16>,
    } else {
    }
    %c0 = arith.constant 0 : index
    %c0_5 = arith.constant 0 : index
    %19 = vector.load %arg12[%c0, %c0_5] : memref<16x104xbf16, #tpu.memory_space<vmem>>, vector<16x104xbf16>
    %20 = arith.index_cast %arg1 : i32 to index
    %c0_6 = arith.constant 0 : index
    %c0_7 = arith.constant 0 : index
    %21 = vector.load %arg5[%20, %c0_6, %c0_7] : memref<3x104x64xbf16, #tpu.memory_space<vmem>>, vector<1x104x64xbf16>
    %22 = vector.shape_cast %21 : vector<1x104x64xbf16> to vector<104x64xbf16>
    %cst = arith.constant dense<0.000000e+00> : vector<16x64xf32>
    %23 = tpu.matmul %19, %22, %cst {dimension_numbers = #tpu.dot_dimension_numbers<[1], [0], [0], [1], [0, 0, 1, 1], [], []>} : vector<16x104xbf16>, vector<104x64xbf16>, vector<16x64xf32> -> vector<16x64xf32>
    %24 = arith.index_cast %arg1 : i32 to index
    %c0_8 = arith.constant 0 : index
    %c0_9 = arith.constant 0 : index
    %25 = vector.load %arg6[%24, %c0_8, %c0_9] : memref<3x1x64xf32, #tpu.memory_space<vmem>>, vector<1x1x64xf32>
    %26 = vector.shape_cast %25 : vector<1x1x64xf32> to vector<1x64xf32>
    %27 = vector.broadcast %26 : vector<1x64xf32> to vector<16x64xf32>
    %28 = arith.addf %23, %27 : vector<16x64xf32>
    %29 = vector.extract_strided_slice %28 {offsets = [0, 0], sizes = [16, 32], strides = [1, 1]} : vector<16x64xf32> to vector<16x32xf32>
    %30 = math.tanh %29 : vector<16x32xf32>
    %31 = vector.extract_strided_slice %28 {offsets = [0, 32], sizes = [16, 32], strides = [1, 1]} : vector<16x64xf32> to vector<16x32xf32>
    %32 = arith.negf %31 : vector<16x32xf32>
    %33 = math.exp %32 : vector<16x32xf32>
    %cst_10 = arith.constant 1.000000e+00 : f32
    %34 = vector.broadcast %cst_10 : f32 to vector<16x32xf32>
    %35 = arith.addf %34, %33 : vector<16x32xf32>
    %36 = arith.divf %34, %35 : vector<16x32xf32>
    %37 = arith.mulf %30, %36 : vector<16x32xf32>
    %38 = arith.index_cast %arg1 : i32 to index
    %c0_11 = arith.constant 0 : index
    %c0_12 = arith.constant 0 : index
    %39 = vector.load %arg7[%38, %c0_11, %c0_12] : memref<3x32x64xf32, #tpu.memory_space<vmem>>, vector<1x32x64xf32>
    %40 = vector.shape_cast %39 : vector<1x32x64xf32> to vector<32x64xf32>
    %cst_13 = arith.constant dense<0.000000e+00> : vector<16x64xf32>
    %41 = tpu.matmul %37, %40, %cst_13 {dimension_numbers = #tpu.dot_dimension_numbers<[1], [0], [0], [1], [0, 0, 1, 1], [], []>} : vector<16x32xf32>, vector<32x64xf32>, vector<16x64xf32> -> vector<16x64xf32>
    %42 = arith.index_cast %arg1 : i32 to index
    %c0_14 = arith.constant 0 : index
    %c0_15 = arith.constant 0 : index
    %43 = vector.load %arg8[%42, %c0_14, %c0_15] : memref<3x1x64xf32, #tpu.memory_space<vmem>>, vector<1x1x64xf32>
    %44 = vector.shape_cast %43 : vector<1x1x64xf32> to vector<1x64xf32>
    %45 = vector.broadcast %44 : vector<1x64xf32> to vector<16x64xf32>
    %46 = arith.addf %41, %45 : vector<16x64xf32>
    %c2_i32_16 = arith.constant 2 : i32
    %47 = arith.cmpi slt, %arg1, %c2_i32_16 : i32
    %48 = arith.extui %47 : i1 to i32
    %c0_i32_17 = arith.constant 0 : i32
    %49 = arith.cmpi ne, %48, %c0_i32_17 : i32
    scf.if %49 {
      %c4 = arith.constant 4 : index
      %c0_20 = arith.constant 0 : index
      %53 = vector.load %arg10[%c4, %c0_20] : memref<24x32xf32, #tpu.memory_space<vmem>>, vector<16x32xf32>
      %54 = vector.extract_strided_slice %46 {offsets = [0, 0], sizes = [16, 32], strides = [1, 1]} : vector<16x64xf32> to vector<16x32xf32>
      %55 = arith.addf %53, %54 : vector<16x32xf32>
      %56 = arith.mulf %55, %9 : vector<16x32xf32>
      %c4_21 = arith.constant 4 : index
      %c0_22 = arith.constant 0 : index
      %57 = vector.load %arg10[%c4_21, %c0_22] : memref<24x32xf32, #tpu.memory_space<vmem>>, vector<16x32xf32>
      tpu.vector_store %arg10[%c4_21, %c0_22], %56 {strides = array<i32>} : memref<24x32xf32, #tpu.memory_space<vmem>>, vector<16x32xf32>,
      %c0_23 = arith.constant 0 : index
      %c0_24 = arith.constant 0 : index
      %58 = vector.load %arg11[%c0_23, %c0_24] : memref<16x32xf32, #tpu.memory_space<vmem>>, vector<16x32xf32>
      %59 = vector.extract_strided_slice %46 {offsets = [0, 32], sizes = [16, 32], strides = [1, 1]} : vector<16x64xf32> to vector<16x32xf32>
      %60 = arith.addf %58, %59 : vector<16x32xf32>
      %c0_25 = arith.constant 0 : index
      %c0_26 = arith.constant 0 : index
      %61 = vector.load %arg11[%c0_25, %c0_26] : memref<16x32xf32, #tpu.memory_space<vmem>>, vector<16x32xf32>
      tpu.vector_store %arg11[%c0_25, %c0_26], %60 {strides = array<i32>} : memref<16x32xf32, #tpu.memory_space<vmem>>, vector<16x32xf32>,
    } else {
    }
    %c2_i32_18 = arith.constant 2 : i32
    %50 = arith.cmpi eq, %arg1, %c2_i32_18 : i32
    %51 = arith.extui %50 : i1 to i32
    %c0_i32_19 = arith.constant 0 : i32
    %52 = arith.cmpi ne, %51, %c0_i32_19 : i32
    scf.if %52 {
      %c0_20 = arith.constant 0 : index
      %c0_21 = arith.constant 0 : index
      %53 = vector.load %arg11[%c0_20, %c0_21] : memref<16x32xf32, #tpu.memory_space<vmem>>, vector<16x32xf32>
      %54 = vector.extract_strided_slice %46 {offsets = [0, 0], sizes = [16, 32], strides = [1, 1]} : vector<16x64xf32> to vector<16x32xf32>
      %55 = arith.addf %53, %54 : vector<16x32xf32>
      %56 = arith.mulf %55, %9 : vector<16x32xf32>
      %c0_22 = arith.constant 0 : index
      %c0_23 = arith.constant 0 : index
      %c0_24 = arith.constant 0 : index
      %57 = vector.load %arg9[%c0_22, %c0_23, %c0_24] : memref<1x16x32xf32, #tpu.memory_space<vmem>>, vector<1x16x32xf32>
      %58 = vector.shape_cast %57 : vector<1x16x32xf32> to vector<16x32xf32>
      %59 = vector.shape_cast %56 : vector<16x32xf32> to vector<1x16x32xf32>
      tpu.vector_store %arg9[%c0_22, %c0_23, %c0_24], %59 {strides = array<i32>} : memref<1x16x32xf32, #tpu.memory_space<vmem>>, vector<1x16x32xf32>,
    } else {
    }
    return
  }
  func.func @transform_0(%arg0: i32, %arg1: i32, %arg2: memref<2xi32, #tpu.memory_space<smem>>) -> (i32, i32, i32) {
    %c0_i32 = arith.constant 0 : i32
    %c0_i32_0 = arith.constant 0 : i32
    %c0_i32_1 = arith.constant 0 : i32
    return %arg0, %c0_i32, %c0_i32_0 : i32, i32, i32
  }
  func.func @transform_1(%arg0: i32, %arg1: i32, %arg2: memref<2xi32, #tpu.memory_space<smem>>) -> (i32, i32, i32) {
    %c0_i32 = arith.constant 0 : i32
    %c0_i32_0 = arith.constant 0 : i32
    %c0_i32_1 = arith.constant 0 : i32
    return %arg0, %c0_i32, %c0_i32_0 : i32, i32, i32
  }
  func.func @transform_2(%arg0: i32, %arg1: i32, %arg2: memref<2xi32, #tpu.memory_space<smem>>) -> (i32, i32, i32) {
    %c0_i32 = arith.constant 0 : i32
    %c0_i32_0 = arith.constant 0 : i32
    %c0_i32_1 = arith.constant 0 : i32
    %c0_i32_2 = arith.constant 0 : i32
    return %c0_i32, %c0_i32_0, %c0_i32_1 : i32, i32, i32
  }
  func.func @transform_3(%arg0: i32, %arg1: i32, %arg2: memref<2xi32, #tpu.memory_space<smem>>) -> (i32, i32, i32) {
    %c0_i32 = arith.constant 0 : i32
    %c0_i32_0 = arith.constant 0 : i32
    %c0_i32_1 = arith.constant 0 : i32
    %c0_i32_2 = arith.constant 0 : i32
    return %c0_i32, %c0_i32_0, %c0_i32_1 : i32, i32, i32
  }
  func.func @transform_4(%arg0: i32, %arg1: i32, %arg2: memref<2xi32, #tpu.memory_space<smem>>) -> (i32, i32, i32) {
    %c0_i32 = arith.constant 0 : i32
    %c0_i32_0 = arith.constant 0 : i32
    %c0_i32_1 = arith.constant 0 : i32
    %c0_i32_2 = arith.constant 0 : i32
    return %c0_i32, %c0_i32_0, %c0_i32_1 : i32, i32, i32
  }
  func.func @transform_5(%arg0: i32, %arg1: i32, %arg2: memref<2xi32, #tpu.memory_space<smem>>) -> (i32, i32, i32) {
    %c0_i32 = arith.constant 0 : i32
    %c0_i32_0 = arith.constant 0 : i32
    %c0_i32_1 = arith.constant 0 : i32
    %c0_i32_2 = arith.constant 0 : i32
    return %c0_i32, %c0_i32_0, %c0_i32_1 : i32, i32, i32
  }
  func.func @transform_6(%arg0: i32, %arg1: i32, %arg2: memref<2xi32, #tpu.memory_space<smem>>) -> (i32, i32, i32) {
    %c0_i32 = arith.constant 0 : i32
    %c0_i32_0 = arith.constant 0 : i32
    %c0_i32_1 = arith.constant 0 : i32
    return %arg0, %c0_i32, %c0_i32_0 : i32, i32, i32
  }
}

</mosaic_0001>

<bundles_post_ra>
// kernel: tpu_custom_call.1
= control target key start
LH: loop header
LB: loop body
LE: loop exit
PB: predicated region body
PF: predicated region fallthrough
CT: control target
= control target key end

     0   :  { %s1054_s27 = smov [#allocation6]   ;;  %s1296_s0 = inlined_call_operand.vmem [shape: s32[2], index: 0, kind: input, shape index: {}]   ;;  %s1297_s1 = inlined_call_operand.vmem [shape: f32[2,16,32], index: 1, kind: input, shape index: {}]   ;;  %s1298_s2 = inlined_call_operand.vmem [shape: bf16[2,16,8], index: 2, kind: input, shape index: {}]   ;;  %s1299_s3 = inlined_call_operand.vmem [shape: bf16[3,104,64], index: 3, kind: input, shape index: {}]   ;;  %s1300_s4 = inlined_call_operand.vmem [shape: f32[3,1,64], index: 4, kind: input, shape index: {}]   ;;  %s1301_s5 = inlined_call_operand.vmem [shape: f32[3,32,64], index: 5, kind: input, shape index: {}]   ;;  %s1302_s6 = inlined_call_operand.vmem [shape: f32[3,1,64], index: 6, kind: input, shape index: {}]   ;;  %s1303_s7 = inlined_call_operand.hbm [shape: f32[2,16,32], index: 7, kind: output, shape index: {}]  }
   0x1   :  { %1306 = sst [smem:[#allocation12_spill]] %s1297_s1  ;;  %s13_s26 = sshll.u32 %s1296_s0, 4  ;;  %s14_s26 = int_to_ptr.vmem [resolvable:$true] %s13_s26 }
   0x2   :  { %16 = dma.vmem_to_smem %s14_s26, 16, %s1054_s27, [#allocation5] }
   0x3   :  { %1016 = dma.done.wait [#allocation5], 16 }
   0x4   :  { %1017 = vsyncadd [#allocation5], 4294967280 }
   0x5   :  { %19 = sfence }
   0x6   :  { %20 = vsyncpa [#allocation8], 0 }
   0x7   :  { %22 = vsyncpa [#allocation8 + $0x1], 0  ;;  %s1111_s28 = smov 0   ;;  %s1113_s29 = smov 0  }
   0x8   :  { %s1115_s30 = smov 0   ;;  %s1117_s8 = smov 0  }
   0x9   :  { %s1119_s9 = smov 0   ;;  %s1121_s10 = smov 0  }
   0xa   :  { %s1123_s0 = smov 0   ;;  %s1125_s11 = smov 0  }
   0xb LB: > { %s776_s12 = sadd.s32 4294967295, %s1052_s11   ;;  %s777_s13 = sadd.s32 4294967294, %s1052_s11   ;;  %s1052_s11 = sphi %s1125_s11, %s28_s11   ;;  %s1048_s0 = sphi %s1123_s0, %s1319_s0   ;;  %s1044_s10 = sphi %s1121_s10, %s1318_s10   ;;  %s1040_s9 = sphi %s1119_s9, %s1317_s9   ;;  %s1036_s8 = sphi %s1117_s8, %s1316_s8   ;;  %s1032_s30 = sphi %s1115_s30, %s1315_s30   ;;  %s1028_s29 = sphi %s1113_s29, %s1314_s29   ;;  %s1024_s28 = sphi %s1111_s28, %s1313_s28  }
   0xc   : > { %s37_s14 = sadd.s32 1, %s1044_s10  ;;  %s40_s15 = sadd.s32 1, %s1048_s0 }
   0xd   : > { %p38_p0 = scmp.ge.s32.totalorder %s37_s14, 3  ;;  %p193_p1 = scmp.ne.s32.totalorder %s1032_s30, %s1028_s29 }
   0xe   : > { %p194_p2 = scmp.eq.s32.totalorder %s776_s12, 5  ;;  %p199_p4 = scmp.ne.s32.totalorder %s1028_s29, %s1024_s28 }
   0xf   : > { %s1321_s14 = smov (%p38_p0, %s37_s14), 0  ;;  %s1323_s15 = smov (!%p38_p0, %s40_s15), %s1048_s0 }
  0x10   : > { %p1160_p3 = por %p194_p2, %p193_p1  ;;  %p42_p5 = scmp.ge.s32.totalorder %s1323_s15, 2 }
  0x11   : > { %p200_p6 = scmp.eq.s32.totalorder %s777_s13, 5  ;;  %p780_p7 = scmp.ge.s32.totalorder %s1052_s11, 1 }
  0x12   : > { %p246_p8 = scmp.lt.s32.totalorder %s1052_s11, 7  ;;  %s1325_s15 = smov (%p42_p5, %s1323_s15), 0 }
  0x13   : > { %1308 = sst [smem:[#allocation11_spill]] %s1325_s15  ;;  %p1170_p9 = por %p200_p6, %p199_p4 }
  0x14   : > { %p247_p10 = pnand %p780_p7, %p246_p8  ;;  %s180_s18 = ssub.s32 %s1048_s0, %s1325_s15 }
  0x15   : > { %s183_s19 = sadd.s32 1, %s1032_s30  ;;  %p181_p11 = scmp.eq.s32.totalorder %s180_s18, 0 }
  0x16   : > { %250 = sbr.rel (%p247_p10) target bundleno = 1163 (0x48b), region = 44  ;;  %s1305_s21 = sand.u32 (!%p247_p10), 1, %s1028_s29  }
  0x17   : > { %s1178_s20 = scalar_select %p181_p11, %s1032_s30, %s183_s19  }
  0x18   : > { %p281_p12 = scmp.lt.s32.totalorder (!%p247_p10), %s1040_s9, 1  ;;  %s781_s22 = sshll.u32 (!%p247_p10), %s1305_s21, 4 }
  0x19   : > { %s1310_s1 = sld [smem:[#allocation12_spill]] (!%p247_p10)  ;;  %s1191_s15 = scalar_lea.vmem (!%p247_p10), [#allocation7], %s781_s22 }
  0x1a   : > { %p786_p13 = scmp.ne.s32.totalorder (!%p247_p10), %s1036_s8, 0 }
  0x1b   : > { %s282_s23 = scalar_select %p281_p12, %s1040_s9, 1 }
  0x1c   : > { %295 = sbr.rel (%p786_p13) target bundleno = 158 (0x9e), region = 48  ;;  %s1055_s21 = smov (!%p786_p13), 96  }
  0x1d   : > { %s834_s24 = sshll.u32 %s282_s23, 4  ;;  %s835_s25 = sshll.u32 %s282_s23, 3 }
  0x1e   : > { %s290_s19 = scalar_lea.vmem %s1298_s2, %s835_s25 }
  0x1f   : > { %s285_s12 = scalar_lea.vmem %s1310_s1, %s834_s24 }
  0x21   : > { %v306_v0 = vld [vmem:[%s290_s19] sm:$0xf]  ;;  %v307_v1 = vld [vmem:[%s290_s19 + $0x4] sm:$0xf]  ;;  %vm296_vm0 = vcmask 261120   ;;  %v1056_v2 = vmov 0.0  }
  0x22   : > { %310 = vrot.lane.b32.xlu0 %v306_v0, %s1055_s21  ;;  %297 = vst.msk [vmem:[#allocation2] sm:$0xff] %vm296_vm0, %v1056_v2  ;;  %v300_v3 = vld [vmem:[%s285_s12] sm:$0xff]  ;;  %v301_v4 = vld [vmem:[%s285_s12 + $0x8] sm:$0xff]  ;;  %vm316_vm1 = vcmask 847616  }
  0x23   : > { %298 = vst.msk [vmem:[#allocation2 + $0x8] sm:$0xff] %vm296_vm0, %v1056_v2 }
  0x24   : > { %299 = vst.msk [vmem:[#allocation2 + $0x10] sm:$0xff] %vm296_vm0, %v1056_v2 }
  0x25   : > { %302 = vst.msk [vmem:[#allocation2 + $0x4] sm:$0xff] %vm296_vm0, %v300_v3 }
  0x26   : > { %303 = vst.msk [vmem:[#allocation2 + $0xc] sm:$0xff] %vm296_vm0, %v301_v4 }
  0x27   : > { %304 = vst.msk [vmem:[#allocation3] sm:$0xff] %vm296_vm0, %v1056_v2 }
  0x28   : > { %305 = vst.msk [vmem:[#allocation3 + $0x8] sm:$0xff] %vm296_vm0, %v1056_v2 }
  0x2a   : > { %312 = vrot.lane.b32.xlu0 %v307_v1, %s1055_s21 }
  0x94   : > { %v311_v5 = vpop.permute.xlu0 %310 }
  0x95   : > { %317 = vst.msk [vmem:[#allocation4] sm:$0xf] %vm316_vm1, %v311_v5 }
  0x9c   : > { %v313_v6 = vpop.permute.xlu0 %312 }
  0x9d   : > { %318 = vst.msk [vmem:[#allocation4 + $0x4] sm:$0xf] %vm316_vm1, %v313_v6 }
  0x9e PF: > { %s319_s22 = sld [smem:[#allocation6 + %s1040_s9]]  ;;  %v320_v7 = vlaneseq  ;;  %v1057_v11 = vmov 0.0   ;;  %s1058_s21 = smov (!%p786_p13), 32  }
  0x9f   : > { %s1059_s23 = smov (!%p786_p13), 64  }
  0xa0   : > { %v321_v8 = vshrl.u32 %v320_v7, 7 }
  0xa2   : > { %v322_v9 = vadd.s32 8, %v321_v8  ;;  %332 = sbr.rel (%p786_p13) target bundleno = 295 (0x127), region = 52 }
  0xa4   : > { %v323_v10 = vstv %s319_s22 }
  0xa5   : > { %vm324_vm2 = vcmp.lt.s32.totalorder %v321_v8, %v323_v10  ;;  %vm325_vm3 = vcmp.lt.s32.totalorder %v322_v9, %v323_v10 }
  0xa6   : > { %v1197_v12 = vsel %vm324_vm2, 1.0, %v1057_v11  ;;  %v1199_v13 = vsel %vm325_vm3, 1.0, %v1057_v11 }
  0xa7   : > { %v340_v14 = vld [vmem:[#allocation2 + $0x4] sm:$0xff]  ;;  %v341_v18 = vld [vmem:[#allocation2 + $0xc] sm:$0xff]  ;;  %vm337_vm4 = vcmask 257024   ;;  %vm352_vm5 = vcmask 519424   ;;  %vm367_vm6 = vcmask 781824  }
  0xa8   : > { %v355_v15 = vld [vmem:[#allocation2 + $0x5] sm:$0xff]  ;;  %v342_v16 = vpack.c.bf16 %v340_v14, %v340_v14  ;;  %v356_v19 = vld [vmem:[#allocation2 + $0xd] sm:$0xff]  ;;  %v343_v20 = vpack.c.bf16 %v341_v18, %v341_v18 }
  0xa9   : > { %v357_v17 = vpack.c.bf16 %v355_v15, %v355_v15  ;;  %v358_v21 = vpack.c.bf16 %v356_v19, %v356_v19  ;;  %v333_v22 = vld [vmem:[#allocation2 + $0x3] sm:$0xff]  ;;  %v334_v24 = vld [vmem:[#allocation2 + $0xb] sm:$0xff] }
  0xaa   : > { %346 = vrot.lane.b32.xlu0 %v342_v16, %s1058_s21  ;;  %v335_v23 = vpack.c.bf16 %v333_v22, %v333_v22  ;;  %v336_v25 = vpack.c.bf16 %v334_v24, %v334_v24 }
  0xab   : > { %361 = vrot.lane.b32.xlu1 %v357_v17, %s1059_s23 }
  0xac   : > { %338 = vst.msk [vmem:[#allocation4] sm:$0xf] %vm337_vm4, %v335_v23 }
  0xad   : > { %339 = vst.msk [vmem:[#allocation4 + $0x4] sm:$0xf] %vm337_vm4, %v336_v25 }
  0xb2   : > { %348 = vrot.lane.b32.xlu0 %v343_v20, %s1058_s21 }
  0xb3   : > { %363 = vrot.lane.b32.xlu1 %v358_v21, %s1059_s23 }
 0x11c   : > { %v347_v26 = vpop.permute.xlu0 %346 }
 0x11d   : > { %v362_v27 = vpop.permute.xlu1 %361  ;;  %353 = vst.msk [vmem:[#allocation4] sm:$0xf] %vm352_vm5, %v347_v26 }
 0x11e   : > { %368 = vst.msk [vmem:[#allocation4] sm:$0xf] %vm367_vm6, %v362_v27 }
 0x124   : > { %v349_v28 = vpop.permute.xlu0 %348 }
 0x125   : > { %v364_v29 = vpop.permute.xlu1 %363  ;;  %354 = vst.msk [vmem:[#allocation4 + $0x4] sm:$0xf] %vm352_vm5, %v349_v28 }
 0x126   : > { %369 = vst.msk [vmem:[#allocation4 + $0x4] sm:$0xf] %vm367_vm6, %v364_v29 }
 0x127 PF: > { %p790_p0 = scmp.ne.s32.totalorder %s1036_s8, 1 }
 0x128   : > { %s1060_s24 = smov (!%p790_p0), 32   ;;  %s1061_s25 = smov (!%p790_p0), 64  }
 0x129   : > { %373 = sbr.rel (%p790_p0) target bundleno = 430 (0x1ae), region = 56 }
 0x12e   : > { %v381_v30 = vld [vmem:[#allocation2 + $0x4] sm:$0xff]  ;;  %v382_v34 = vld [vmem:[#allocation2 + $0xc] sm:$0xff]  ;;  %vm378_vm7 = vcmask 257024   ;;  %vm393_vm8 = vcmask 519424   ;;  %vm408_vm9 = vcmask 781824  }
 0x12f   : > { %v396_v31 = vld [vmem:[#allocation2 + $0x6] sm:$0xff]  ;;  %v383_v32 = vpack.c.bf16 %v381_v30, %v381_v30  ;;  %v397_v35 = vld [vmem:[#allocation2 + $0xe] sm:$0xff]  ;;  %v384_v36 = vpack.c.bf16 %v382_v34, %v382_v34 }
 0x130   : > { %v398_v33 = vpack.c.bf16 %v396_v31, %v396_v31  ;;  %v399_v37 = vpack.c.bf16 %v397_v35, %v397_v35  ;;  %v374_v38 = vld [vmem:[#allocation2 + $0x2] sm:$0xff]  ;;  %v375_v40 = vld [vmem:[#allocation2 + $0xa] sm:$0xff] }
 0x131   : > { %387 = vrot.lane.b32.xlu0 %v383_v32, %s1060_s24  ;;  %v376_v39 = vpack.c.bf16 %v374_v38, %v374_v38  ;;  %v377_v41 = vpack.c.bf16 %v375_v40, %v375_v40 }
 0x132   : > { %402 = vrot.lane.b32.xlu1 %v398_v33, %s1061_s25 }
 0x133   : > { %379 = vst.msk [vmem:[#allocation4] sm:$0xf] %vm378_vm7, %v376_v39 }
 0x134   : > { %380 = vst.msk [vmem:[#allocation4 + $0x4] sm:$0xf] %vm378_vm7, %v377_v41 }
 0x139   : > { %389 = vrot.lane.b32.xlu0 %v384_v36, %s1060_s24 }
 0x13a   : > { %404 = vrot.lane.b32.xlu1 %v399_v37, %s1061_s25 }
 0x1a3   : > { %v388_v42 = vpop.permute.xlu0 %387 }
 0x1a4   : > { %v403_v43 = vpop.permute.xlu1 %402  ;;  %394 = vst.msk [vmem:[#allocation4] sm:$0xf] %vm393_vm8, %v388_v42 }
 0x1a5   : > { %409 = vst.msk [vmem:[#allocation4] sm:$0xf] %vm408_vm9, %v403_v43 }
 0x1ab   : > { %v390_v44 = vpop.permute.xlu0 %389 }
 0x1ac   : > { %v405_v45 = vpop.permute.xlu1 %404  ;;  %395 = vst.msk [vmem:[#allocation4 + $0x4] sm:$0xf] %vm393_vm8, %v390_v44 }
 0x1ad   : > { %410 = vst.msk [vmem:[#allocation4 + $0x4] sm:$0xf] %vm408_vm9, %v405_v45 }
 0x1ae PF: > { %p791_p1 = scmp.ne.s32.totalorder %s1036_s8, 2 }
 0x1af   : > { %s1062_s26 = smov (!%p791_p1), 32   ;;  %s1063_s27 = smov (!%p791_p1), 64  }
 0x1b0   : > { %414 = sbr.rel (%p791_p1) target bundleno = 565 (0x235), region = 60 }
 0x1b5   : > { %v422_v46 = vld [vmem:[#allocation2 + $0x4] sm:$0xff]  ;;  %v423_v50 = vld [vmem:[#allocation2 + $0xc] sm:$0xff]  ;;  %vm419_vm10 = vcmask 257024   ;;  %vm434_vm11 = vcmask 519424   ;;  %vm449_vm12 = vcmask 781824  }
 0x1b6   : > { %v437_v47 = vld [vmem:[#allocation2 + $0x8] sm:$0xff]  ;;  %v424_v48 = vpack.c.bf16 %v422_v46, %v422_v46  ;;  %v438_v51 = vld [vmem:[#allocation2 + $0x10] sm:$0xff]  ;;  %v425_v52 = vpack.c.bf16 %v423_v50, %v423_v50  ;;  %v415_v54 = vld [vmem:[#allocation2] sm:$0xff] }
 0x1b7   : > { %v439_v49 = vpack.c.bf16 %v437_v47, %v437_v47  ;;  %v440_v53 = vpack.c.bf16 %v438_v51, %v438_v51  ;;  %v417_v55 = vpack.c.bf16 %v415_v54, %v415_v54 }
 0x1b8   : > { %428 = vrot.lane.b32.xlu0 %v424_v48, %s1062_s26 }
 0x1b9   : > { %443 = vrot.lane.b32.xlu1 %v439_v49, %s1063_s27  ;;  %420 = vst.msk [vmem:[#allocation4] sm:$0xf] %vm419_vm10, %v417_v55 }
 0x1ba   : > { %421 = vst.msk [vmem:[#allocation4 + $0x4] sm:$0xf] %vm419_vm10, %v439_v49 }
 0x1c0   : > { %430 = vrot.lane.b32.xlu0 %v425_v52, %s1062_s26 }
 0x1c1   : > { %445 = vrot.lane.b32.xlu1 %v440_v53, %s1063_s27 }
 0x22a   : > { %v429_v56 = vpop.permute.xlu0 %428 }
 0x22b   : > { %v444_v57 = vpop.permute.xlu1 %443  ;;  %435 = vst.msk [vmem:[#allocation4] sm:$0xf] %vm434_vm11, %v429_v56 }
 0x22c   : > { %450 = vst.msk [vmem:[#allocation4] sm:$0xf] %vm449_vm12, %v444_v57 }
 0x232   : > { %v431_v58 = vpop.permute.xlu0 %430 }
 0x233   : > { %v446_v59 = vpop.permute.xlu1 %445  ;;  %436 = vst.msk [vmem:[#allocation4 + $0x4] sm:$0xf] %vm434_vm11, %v431_v58 }
 0x234   : > { %451 = vst.msk [vmem:[#allocation4 + $0x4] sm:$0xf] %vm449_vm12, %v446_v59 }
 0x235 PF: > { %s837_s12 = smul.u32 52, %s1036_s8  ;;  %s470_s19 = scalar_lea.vmem %s1300_s4, %s1036_s8  ;;  %vm523_vm13 = vcmask 1043456   ;;  %vm519_vm14 = vcmask 850944   ;;  %vm602_vm7 = vcmask 261120  }
 0x236   : > { %v930_v7 = vld [vmem:[%s470_s19] ss:$0 sm:$0xff]  ;;  %s824_s24 = sshll.u32 %s1036_s8, 5  ;;  %s597_s18 = scalar_lea.vmem %s1302_s6, %s1036_s8 }
 0x237   : > { %s456_s23 = scalar_lea.vmem %s1299_s3, %s837_s12  ;;  %s1219_s27 = scalar_lea.vmem %s1301_s5, %s824_s24  ;;  %v931_v50 = vld [vmem:[%s597_s18] ss:$0 sm:$0xff] }
 0x238   : > { %v469_v60 = vld [vmem:[%s456_s23 + $0x30] sm:$0xf]  ;;  %v843_v0 = vld [vmem:[%s456_s23 + $0x28] sm:$0xff]  ;;  %v842_v1 = vld [vmem:[%s456_s23 + $0x20] sm:$0xff]  ;;  %s1064_s19 = smov 96   ;;  %p827_p2 = scmp.ge.s32.totalorder %s1036_s8, 2 }
 0x239   : > { %v505_v61 = vunpack.c.l.b16 %v469_v60  ;;  %v841_v2 = vld [vmem:[%s456_s23 + $0x18] sm:$0xff]  ;;  %v840_v3 = vld [vmem:[%s456_s23 + $0x10] sm:$0xff]  ;;  %v839_v4 = vld [vmem:[%s456_s23 + $0x8] sm:$0xff] }
 0x23a   : > { %v838_v5 = vld [vmem:[%s456_s23] sm:$0xff]  ;;  %v596_v11 = vld [vmem:[%s1219_s27 + $0x18] sm:$0xff]  ;;  %v595_v14 = vld [vmem:[%s1219_s27 + $0x10] sm:$0xff]  ;;  %s1065_s23 = smov (!%p827_p2), 96  }
 0x23b   : > { %v512_v62 = vpack.c.b16 %v505_v61, %v505_v61  ;;  %v836_v6 = vld [vmem:[#allocation4] sm:$0xff]  ;;  %621 = vmatpush.msra.mxu1 %v596_v11  ;;  %v593_v43 = vld [vmem:[%s1219_s27] sm:$0xff] }
 0x23c   : > { %v594_v17 = vld [vmem:[%s1219_s27 + $0x8] sm:$0xff] }
 0x23d   : > { %v525_v63 = vsel %vm523_vm13, %v512_v62, 0  ;;  %622 = vmatpush.msra.mxu1 %v595_v14 }
 0x23e   : > { %528 = vmatpush.bf16.msra.mxu0 %v525_v63 }
 0x23f   : > { %623 = vmatpush.msra.mxu1 %v594_v17 }
 0x241   : > { %624 = vmatpush.msra.mxu1 %v593_v43 }
 0x242   : > { %529 = vmatpush.bf16.msra.mxu0 %v843_v0 }
 0x246   : > { %530 = vmatpush.bf16.msra.mxu0 %v842_v1 }
 0x24a   : > { %531 = vmatpush.bf16.msra.mxu0 %v841_v2 }
 0x24e   : > { %532 = vmatpush.bf16.msra.mxu0 %v840_v3 }
 0x252   : > { %533 = vmatpush.bf16.msra.mxu0 %v839_v4 }
 0x256   : > { %534 = vmatpush.bf16.msra.mxu0 %v838_v5 }
 0x259   : > { %821 = vmatmul.msk.bf16.vlgmr.msra.gmra.mxu0 %vm519_vm14, %v836_v6 }
 0x2d6   : > { %v536_v8 = vpop.f32.mrf.mxu0 }
 0x2d7   : > { %v537_v9 = vadd.f32 %v930_v7, %v536_v8 }
 0x2d9   : > { %v822_v10 = vmul.f32 -1.442695, %v537_v9 }
 0x2db   : > { %932 = vpow2.f32 %v822_v10 }
 0x2de   : > { %v538_v15 = vpop.f32.mrf.mxu0 }
 0x2df   : > { %v539_v16 = vadd.f32 %v930_v7, %v538_v15 }
 0x2e1   : > { %v933_v18 = vpop.eup %932  ;;  %v823_v19 = vmul.f32 -1.442695, %v539_v16 }
 0x2e2   : > { %v549_v20 = vadd.f32 1.0, %v933_v18 }
 0x2e3   : > { %934 = vpow2.f32 %v823_v19 }
 0x2e4   : > { %936 = vrcp.f32 %v549_v20  ;;  %v562_v26 = vand.u32 2147483648, %v549_v20  ;;  %v560_v28 = vand.u32 2147483647, %v549_v20  ;;  %vm556_vm0 = vweird.f32 %v549_v20 }
 0x2e6   : > { %v563_v31 = vor.u32 1.1754944e-38, %v562_v26  ;;  %vm561_vm2 = vcmp.eq.f32.partialorder %v560_v28, 8.507059e+37 }
 0x2e9   : > { %v935_v21 = vpop.eup %934 }
 0x2ea   : > { %v937_v22 = vpop.eup %936  ;;  %v550_v23 = vadd.f32 1.0, %v935_v21 }
 0x2eb   : > { %v552_v24 = vmul.f32 %v937_v22, %v549_v20  ;;  %vm557_vm15 = vweird.f32 %v937_v22 }
 0x2ec   : > { %938 = vrcp.f32 %v550_v23  ;;  %vm558_vm1 = vmor %vm556_vm0, %vm557_vm15  ;;  %v577_v36 = vand.u32 2147483648, %v550_v23  ;;  %v575_v38 = vand.u32 2147483647, %v550_v23  ;;  %vm571_vm4 = vweird.f32 %v550_v23 }
 0x2ed   : > { %v553_v25 = vsub.f32 1.0, %v552_v24  ;;  %940 = vtanh.f32 %v537_v9 }
 0x2ee   : > { %v578_v40 = vor.u32 1.1754944e-38, %v577_v36  ;;  %vm576_vm6 = vcmp.eq.f32.partialorder %v575_v38, 8.507059e+37  ;;  %942 = vtanh.f32 %v539_v16 }
 0x2ef   : > { %v554_v27 = vmul.f32 %v937_v22, %v553_v25 }
 0x2f1   : > { %v555_v29 = vadd.f32 %v937_v22, %v554_v27 }
 0x2f2   : > { %v939_v30 = vpop.eup %938 }
 0x2f3   : > { %v559_v32 = vsel %vm558_vm1, %v937_v22, %v555_v29  ;;  %v567_v33 = vmul.f32 %v939_v30, %v550_v23  ;;  %vm572_vm3 = vweird.f32 %v939_v30  ;;  %v941_v44 = vpop.eup %940 }
 0x2f4   : > { %v564_v34 = vsel %vm561_vm2, %v563_v31, %v559_v32  ;;  %vm573_vm5 = vmor %vm571_vm4, %vm572_vm3  ;;  %v943_v47 = vpop.eup %942 }
 0x2f5   : > { %583 = vrot.lane.b32.xlu0 %v564_v34, %s1064_s19  ;;  %v568_v35 = vsub.f32 1.0, %v567_v33 }
 0x2f7   : > { %v569_v37 = vmul.f32 %v939_v30, %v568_v35 }
 0x2f9   : > { %v570_v39 = vadd.f32 %v939_v30, %v569_v37 }
 0x2fb   : > { %v574_v41 = vsel %vm573_vm5, %v939_v30, %v570_v39 }
 0x2fc   : > { %v579_v42 = vsel %vm576_vm6, %v578_v40, %v574_v41 }
 0x2fd   : > { %585 = vrot.lane.b32.xlu0 %v579_v42, %s1064_s19 }
 0x367   : > { %v584_v45 = vpop.permute.xlu0 %583 }
 0x368   : > { %v589_v46 = vmul.f32 %v941_v44, %v584_v45 }
 0x36a   : > { %825 = vmatmul.msk.f32.vlgmr.msra.gmra.mxu1 %vm602_vm7, %v589_v46 }
 0x36f   : > { %v586_v48 = vpop.permute.xlu0 %585 }
 0x370   : > { %v590_v49 = vmul.f32 %v943_v47, %v586_v48 }
 0x372   : > { %826 = vmatmul.msk.f32.gmra.mxu1 %vm602_vm7, %v590_v49 }
 0x3e7   : > { %v626_v51 = vpop.f32.mrf.mxu1 }
 0x3e8   : > { %v627_v52 = vadd.f32 %v931_v50, %v626_v51 }
 0x3ec   : > { %635 = sbr.rel (%p827_p2) target bundleno = 1135 (0x46f), region = 64 }
 0x3ef   : > { %v629_v53 = vpop.f32.mrf.mxu1 }
 0x3f0   : > { %v630_v54 = vadd.f32 %v931_v50, %v629_v53 }
 0x3f1   : > { %648 = vrot.lane.b32.xlu0 %v627_v52, %s1065_s23  ;;  %v636_v55 = vld [vmem:[#allocation2 + $0x4] sm:$0xff]  ;;  %v637_v56 = vld [vmem:[#allocation2 + $0xc] sm:$0xff]  ;;  %v644_v61 = vld [vmem:[#allocation3] sm:$0xff] }
 0x3f2   : > { %v638_v57 = vadd.f32 %v636_v55, %v627_v52  ;;  %v639_v58 = vadd.f32 %v637_v56, %v630_v54  ;;  %v645_v0 = vld [vmem:[#allocation3 + $0x8] sm:$0xff] }
 0x3f4   : > { %v640_v59 = vmul.f32 %v1197_v12, %v638_v57  ;;  %v641_v60 = vmul.f32 %v1199_v13, %v639_v58 }
 0x3f6   : > { %642 = vst.msk [vmem:[#allocation2 + $0x4] sm:$0xff] %vm602_vm7, %v640_v59 }
 0x3f7   : > { %643 = vst.msk [vmem:[#allocation2 + $0xc] sm:$0xff] %vm602_vm7, %v641_v60 }
 0x3f9   : > { %650 = vrot.lane.b32.xlu0 %v630_v54, %s1065_s23 }
 0x463   : > { %v649_v62 = vpop.permute.xlu0 %648 }
 0x464   : > { %v654_v63 = vadd.f32 %v649_v62, %v644_v61 }
 0x466   : > { %656 = vst.msk [vmem:[#allocation3] sm:$0xff] %vm602_vm7, %v654_v63 }
 0x46b   : > { %v651_v1 = vpop.permute.xlu0 %650 }
 0x46c   : > { %v655_v2 = vadd.f32 %v651_v1, %v645_v0 }
 0x46e   : > { %657 = vst.msk [vmem:[#allocation3 + $0x8] sm:$0xff] %vm602_vm7, %v655_v2 }
 0x46f PF: > { %660 = sbr.rel (%p791_p1) target bundleno = 1147 (0x47b), region = 68 }
 0x474   : > { %v661_v3 = vld [vmem:[#allocation3] sm:$0xff] }
 0x475   : > { %v662_v4 = vld [vmem:[#allocation3 + $0x8] sm:$0xff]  ;;  %v663_v5 = vadd.f32 %v661_v3, %v627_v52 }
 0x476   : > { %v664_v6 = vadd.f32 %v662_v4, %v630_v54 }
 0x477   : > { %v665_v7 = vmul.f32 %v1197_v12, %v663_v5 }
 0x478   : > { %v666_v8 = vmul.f32 %v1199_v13, %v664_v6 }
 0x479   : > { %667 = vst.msk [vmem:[%s1191_s15] sm:$0xff] %vm602_vm7, %v665_v7 }
 0x47a   : > { %668 = vst.msk [vmem:[%s1191_s15 + $0x8] sm:$0xff] %vm602_vm7, %v666_v8 }
 0x47b PF: > { %s844_s8 = sshll.u32 %s1040_s9, 4  ;;  %s682_s27 = sshll.u32 %s1191_s15, 4  ;;  %s683_s27 = int_to_ptr.vmem [resolvable:$true] %s682_s27 }
 0x47c   : > { %s681_s26 = scalar_lea.hbm %s1303_s7, %s844_s8  ;;  %s1311_s13 = sand.u32 1, %s1028_s29  }
 0x47d   : > { %s684_s12 = sshll.u32 %s681_s26, 4  ;;  %s670_s18 = scalar_lea.sflag [#allocation8], %s1311_s13  ;;  %s685_s12 = int_to_ptr.hbm [resolvable:$true] %s684_s12 }
 0x47e   : > { %s970_s19 = sshra.s32 %s685_s12, 4  ;;  %s976_s9 = scalar_lea.hbm %s1303_s7, 32  ;;  %s971_s19 = int_to_ptr.hbm [resolvable:$true] %s970_s19 }
 0x47f   : > { %s972_s22 = scalar_lea.hbm %s971_s19, 16  ;;  %p977_p7 = scmp.lt.s32.totalorder %s971_s19, %s1303_s7 }
 0x480   : > { %p973_p4 = scmp.ne.s32.totalorder %s971_s19, %s972_s22  ;;  %p978_p8 = scmp.lt.s32.totalorder %s976_s9, %s972_s22 }
 0x482   : > { %p974_p5 = pnand %p973_p4, %p1160_p3  ;;  %p979_p10 = por %p978_p8, %p977_p7 }
 0x484   : > { %p975_p6 = pneg %p974_p5 }
 0x486   : > { %p980_p11 = pnand %p979_p10, %p975_p6 }
 0x488   : > { %983 = shalt.err (!%p980_p11)
}
 0x489   : > { %s1066_s15 = smov 128   ;;  %s1067_s8 = smov 8  }
 0x48a   : > { %845 = dma.vmem_to_hbm [thread:$0]  (%p1160_p3), %s683_s27, 256, %s685_s12, %s670_s18, %s1066_s15, %s1066_s15, %s1067_s8  }
 0x48b PF: > { %p851_p12 = scmp.ge.s32.totalorder %s1052_s11, 2  ;;  %s699_s25 = sand.u32 1, %s1024_s28  }
 0x48c   : > { %s700_s1 = scalar_lea.sflag [#allocation8], %s699_s25 }
 0x48d   : > { %p848_p13 = pnand %p851_p12, %p1170_p9 }
 0x48f   : > { %p849_p0 = pneg %p848_p13 }
 0x491   : > { %1019 = dma.done.wait (%p849_p0), %s700_s1, 256  }
 0x492   : > { %1021 = vsyncadd (%p849_p0), %s700_s1, 4294967040  ;;  %s28_s11 = sadd.s32 1, %s1052_s11   ;;  %s1312_s16 = sld [smem:[#allocation11_spill]] }
 0x493   : > { %p25_p1 = scmp.ge.s32.totalorder %s28_s11, 8   ;;  %s1313_s28 = smov %s1028_s29 }
 0x494   : > { %s1314_s29 = smov %s1032_s30  ;;  %s1315_s30 = smov %s1178_s20 }
 0x495   : > { %s1316_s8 = smov %s1044_s10  ;;  %s1317_s9 = smov %s1048_s0 }
 0x496   : > { %s1318_s10 = smov %s1321_s14  ;;  %27 = sbr.rel (!%p25_p1) target bundleno = 11 (0xb), region = 110 }
 0x498   : > { %s1319_s0 = smov %s1312_s16 }
 0x49b   :  { %706 = vsyncpa [#allocation8], 1 }
 0x49c   :  { %708 = vsyncpa [#allocation8 + $0x1], 1 }

</bundles_post_ra>
